<compile_context>
chip_gen: v6e
topology: v6e:2x2x1
jax: 0.10.0
libtpu: 0.0.40
codegen_flags: <defaults>
</compile_context>

<pallas_src>
import jax
import jax.numpy as jnp
from jax.experimental import pallas as pl
from jax.experimental.pallas import tpu as pltpu


def _pool_kernel(x_ref, o_ref):
    """Adaptive (avg+max)/2 pooling, computed once.

    x_ref : VMEM (kh*kw, lane_block)  pooling-window axis on sublanes
    o_ref : VMEM (1, lane_block)      f32
    """
    xw = x_ref[...].astype(jnp.float32)
    avg = jnp.mean(xw, axis=0, keepdims=True)
    mx = jnp.max(xw, axis=0, keepdims=True)
    o_ref[...] = ((avg + mx) * 0.5).astype(o_ref.dtype)


def _noise_add_kernel(fac_ref, pooled_ref, noise_ref, o_ref):
    """out[tile] = pooled + facs[tile] * noise[tile].

    fac_ref    : VMEM (tile_n, 1)       per-cutout noise scale (lane broadcast)
    pooled_ref : VMEM (1, lane_block)   shared pooled row (sublane broadcast)
    noise_ref  : VMEM (tile_n, lane_block)
    o_ref      : VMEM (tile_n, lane_block)
    """
    pooled = pooled_ref[...]                       # already f32
    fac = fac_ref[...].astype(jnp.float32)
    noise = noise_ref[...].astype(jnp.float32)
    o_ref[...] = (pooled + fac * noise).astype(o_ref.dtype)


def _pick_lane_block(lanes, cap=32768):
    """Lane-block <= cap. Prefer a multiple-of-128 divisor (dense stores);
    otherwise fall back to `cap` with a ceil-div grid (masked last block)."""
    if lanes <= cap:
        return lanes                              # full dim -> always legal
    for b in range(cap - cap % 128, 127, -128):
        if lanes % b == 0:
            return b
    return cap                                    # bounded; last block masked


def _pick_tile_n(cutn, bytes_per_row, target_bytes):
    """Rows per block: a divisor of cutn that is a multiple of 8 (or cutn
    itself), as large as possible while the block stays under target_bytes."""
    cands = sorted({d for d in range(8, cutn + 1, 8) if cutn % d == 0} | {cutn})
    best = cands[0]
    for d in cands:
        if d * bytes_per_row <= target_bytes:
            best = d
    return best


def make_cutouts(x, cut_size, cutn, noise_fac=0.1, *, key):
    """x: (B, C, H, W) NCHW, B must be 1 (see header comment)."""
    B, C, H, W = x.shape
    assert B == 1, "facs broadcast in the reference module requires B == 1"
    # TODO(synk): adaptive pooling with H/W not divisible by cut_size (variable
    # window sizes) is not implemented; for divisible sizes this is exact.
    assert H % cut_size == 0 and W % cut_size == 0
    cs = cut_size
    kh, kw = H // cs, W // cs
    lanes = C * cs * cs
    itemsize = jnp.dtype(x.dtype).itemsize

    # glue: expose pooling windows as the leading axis, flatten (C, cs, cs) lanes.
    # TODO(synk): for very large images this transpose is an extra HBM pass;
    # allow_input_fusion lets XLA fuse it into the pooling call when possible.
    xr = x.reshape(C, cs, kh, cs, kw)
    x_win = jnp.transpose(xr, (2, 4, 0, 1, 3)).reshape(kh * kw, lanes)

    lane_block = _pick_lane_block(lanes)
    lane_tiles = pl.cdiv(lanes, lane_block)

    # ---- 1) shared pooled row: computed once (hoisted out of the cutout loop).
    pool_vmem = 2 * (kh * kw * lane_block * itemsize + lane_block * 4) + (2 << 20)
    pooled = pl.pallas_call(
        _pool_kernel,
        out_shape=jax.ShapeDtypeStruct((1, lanes), jnp.float32),
        grid=(lane_tiles,),
        in_specs=[pl.BlockSpec((kh * kw, lane_block), lambda l: (0, l))],
        out_specs=pl.BlockSpec((1, lane_block), lambda l: (0, l)),
        compiler_params=pltpu.CompilerParams(
            dimension_semantics=("parallel",),
            allow_input_fusion=[True],
            vmem_limit_bytes=int(max(pool_vmem, 32 << 20)),
        ),
    )(x_win)

    if not noise_fac:  # reference module skips the noise step when noise_fac == 0
        out = jnp.broadcast_to(pooled.astype(x.dtype), (cutn, lanes))
        return out.reshape(cutn * B, C, cs, cs)

    # ---- 2) per-cutout noise add: tile_n cutouts x lane_block lanes per step.
    tile_n = _pick_tile_n(cutn, lane_block * itemsize, target_bytes=4 << 20)
    n_tiles = cutn // tile_n                      # exact: tile_n divides cutn

    kf, kn = jax.random.split(key)
    facs = jax.random.uniform(kf, (cutn, 1), dtype=jnp.float32,
                              minval=0.0, maxval=noise_fac)
    noise = jax.random.normal(kn, (cutn, lanes), dtype=x.dtype)

    blk = tile_n * lane_block * itemsize
    vmem_needed = 2 * (2 * blk + lane_block * 4 + tile_n * 128 * 4)
    out = pl.pallas_call(
        _noise_add_kernel,
        out_shape=jax.ShapeDtypeStruct((cutn, lanes), x.dtype),
        # lane axis outermost -> pooled's block index is constant across the
        # inner cutout loop, so the shared row stays resident (no re-DMA).
        grid=(lane_tiles, n_tiles),
        in_specs=[
            pl.BlockSpec((tile_n, 1), lambda l, n: (n, 0)),           # facs
            pl.BlockSpec((1, lane_block), lambda l, n: (0, l)),       # pooled
            pl.BlockSpec((tile_n, lane_block), lambda l, n: (n, l)),  # noise
        ],
        out_specs=pl.BlockSpec((tile_n, lane_block), lambda l, n: (n, l)),
        compiler_params=pltpu.CompilerParams(
            dimension_semantics=("parallel", "parallel"),
            vmem_limit_bytes=int(max(vmem_needed + (4 << 20), 32 << 20)),
        ),
    )(facs, pooled, noise)

    # glue: back to NCHW cutout batch (torch.cat(cutouts, 0)); no padding rows,
    # so this reshape is free.
    return out.reshape(cutn * B, C, cs, cs)


if __name__ == "__main__":
    key = jax.random.PRNGKey(0)
    kx, knoise = jax.random.split(key)

    B, C, H, W = 1, 4, 16, 16
    cut_size, cutn = 8, 8

    x = jax.random.normal(kx, (B, C, H, W), dtype=jnp.float32)
    out = make_cutouts(x, cut_size, cutn, noise_fac=0.1, key=knoise)
    out = jax.block_until_ready(out)

    assert out.shape == (cutn * B, C, cut_size, cut_size), out.shape
    assert out.dtype == x.dtype
    assert bool(jnp.all(jnp.isfinite(out)))

    # sanity vs. pure-JAX adaptive pooling reference
    xr = x.reshape(C, cut_size, H // cut_size, cut_size, W // cut_size)
    ref_pool = (xr.mean(axis=(2, 4)) + xr.max(axis=(2, 4))) * 0.5   # (C, cs, cs)
    # with noise: bounded by facs (<0.1) * |N(0,1)| (few sigma)
    assert float(jnp.max(jnp.abs(out - ref_pool[None]))) < 1.0
    # without noise: exact pooling path
    out0 = make_cutouts(x, cut_size, cutn, noise_fac=0.0, key=knoise)
    out0 = jax.block_until_ready(out0)
    assert bool(jnp.allclose(out0, jnp.broadcast_to(ref_pool[None], out0.shape),
                             atol=1e-5))

    print("KERNEL_OK")
</pallas_src>

<mosaic_0001>
module attributes {stable_mosaic.version = 11 : i64} {
  func.func @_pool_kernel(%arg0: i32, %arg1: memref<4x256xf32, #tpu.memory_space<vmem>>, %arg2: memref<1x256xf32, #tpu.memory_space<vmem>>) attributes {dimension_semantics = [#tpu.dimension_semantics<parallel>], iteration_bounds = array<i64: 1>, scalar_prefetch = 0 : i64, scratch_operands = 0 : i64, tpu.core_type = #tpu.core_type<tc>, window_params = [{transform_indices = @transform_0, window_bounds = array<i64: 4, 256>}, {transform_indices = @transform_1, window_bounds = array<i64: 1, 256>}]} {
    %c0 = arith.constant 0 : index
    %c0_0 = arith.constant 0 : index
    %0 = vector.load %arg1[%c0, %c0_0] : memref<4x256xf32, #tpu.memory_space<vmem>>, vector<4x256xf32>
    %cst = arith.constant dense<0.000000e+00> : vector<256xf32>
    %1 = vector.multi_reduction <add>, %0, %cst [0] : vector<4x256xf32> to vector<256xf32>
    %2 = vector.shape_cast %1 : vector<256xf32> to vector<1x256xf32>
    %cst_1 = arith.constant 4.000000e+00 : f32
    %3 = vector.broadcast %cst_1 : f32 to vector<1x256xf32>
    %4 = arith.divf %2, %3 : vector<1x256xf32>
    %cst_2 = arith.constant dense<0xFF800000> : vector<256xf32>
    %5 = vector.multi_reduction <maximumf>, %0, %cst_2 [0] : vector<4x256xf32> to vector<256xf32>
    %6 = vector.shape_cast %5 : vector<256xf32> to vector<1x256xf32>
    %7 = arith.addf %4, %6 : vector<1x256xf32>
    %cst_3 = arith.constant 5.000000e-01 : f32
    %8 = vector.broadcast %cst_3 : f32 to vector<1x256xf32>
    %9 = arith.mulf %7, %8 : vector<1x256xf32>
    %c0_4 = arith.constant 0 : index
    %c0_5 = arith.constant 0 : index
    %10 = vector.load %arg2[%c0_4, %c0_5] : memref<1x256xf32, #tpu.memory_space<vmem>>, vector<1x256xf32>
    tpu.vector_store %arg2[%c0_4, %c0_5], %9 {strides = array<i32>} : memref<1x256xf32, #tpu.memory_space<vmem>>, vector<1x256xf32>,
    return
  }
  func.func @transform_0(%arg0: i32) -> (i32, i32) {
    %c0_i32 = arith.constant 0 : i32
    %c0_i32_0 = arith.constant 0 : i32
    return %c0_i32, %arg0 : i32, i32
  }
  func.func @transform_1(%arg0: i32) -> (i32, i32) {
    %c0_i32 = arith.constant 0 : i32
    %c0_i32_0 = arith.constant 0 : i32
    return %c0_i32, %arg0 : i32, i32
  }
}

</mosaic_0001>

<bundles_post_ra>
// kernel: tpu_custom_call.1
= control target key start
LH: loop header
LB: loop body
LE: loop exit
PB: predicated region body
PF: predicated region fallthrough
CT: control target
= control target key end

     0   :  { %6 = vsyncpa [#allocation3], 0  ;;  %s166_s0 = inlined_call_operand.hbm [shape: f32[4,256], index: 0, kind: input, shape index: {}]   ;;  %s167_s1 = inlined_call_operand.hbm [shape: f32[1,256], index: 1, kind: output, shape index: {}]  }
   0x1   :  { %7 = vsyncpa [#allocation4], 0  ;;  %s147_s6 = smov [#allocation2]  }
   0x2   :  { %s14_s7 = sshll.u32 %s147_s6, 4  ;;  %s15_s7 = int_to_ptr.vmem [resolvable:$true] %s14_s7 }
   0x3   :  { %s111_s8 = scalar_lea.vmem %s15_s7, 128  ;;  %p116_p1 = scmp.lt.s32.totalorder %s15_s7, %s15_s7 }
   0x4   :  { %p112_p0 = scmp.ne.s32.totalorder %s15_s7, %s111_s8  ;;  %p117_p2 = scmp.lt.s32.totalorder %s111_s8, %s111_s8 }
   0x6   :  { %p118_p3 = por %p117_p2, %p116_p1 }
   0x8   :  { %p119_p4 = pnand %p118_p3, %p112_p0 }
   0xa   :  { %122 = shalt.err (!%p119_p4)
}
   0xb   :  { %17 = dma.hbm_to_vmem [thread:$0]  %s166_s0, 128, %s15_s7, [#allocation3]  }
   0xc   :  { %143 = dma.done.wait [#allocation3], 128  }
   0xd   :  { %144 = vsyncadd [#allocation3], 4294967168  ;;  %vm25_vm0 = vcmask 1043456   ;;  %v21_v0 = vld [vmem:[#allocation2] sm:$0xff]  ;;  %v148_v24 = vmov 1966171168   ;;  %v67_v26 = vlaneseq }
   0xe   :  { %v23_v1 = vcombine.high %v21_v0, %v21_v0  ;;  %v26_v2 = vsel %vm25_vm0, %v21_v0, 0.0  ;;  %v43_v3 = vsel %vm25_vm0, %v21_v0, -inf  ;;  %v65_v25 = vunpack.c.l.s4 %v148_v24  ;;  %s149_s0 = smov [#allocation5]  }
   0xf   :  { %v27_v4 = vrot.slane %v26_v2, 4  ;;  %v44_v5 = vrot.slane %v43_v3, 4  ;;  %v68_v37 = vshrl.u32 %v67_v26, 7  ;;  %s90_s11 = sshll.u32 %s149_s0, 4  ;;  %vm81_vm1 = vcmp.lt.s32.totalorder %v67_v26, 256  ;;  %s91_s11 = int_to_ptr.vmem [resolvable:$true] %s90_s11 }
  0x10   :  { %v33_v6 = vsel %vm25_vm0, %v23_v1, 0.0  ;;  %v50_v7 = vsel %vm25_vm0, %v23_v1, -inf  ;;  %v66_v36 = vunpack.c.0.s8 %v65_v25  ;;  %s123_s12 = scalar_lea.vmem %s91_s11, 32  ;;  %p128_p6 = scmp.lt.s32.totalorder %s91_s11, %s91_s11 }
  0x11   :  { %v28_v8 = vadd.f32 %v27_v4, %v26_v2  ;;  %v34_v9 = vrot.slane %v33_v6, 4  ;;  %v45_v10 = vmax.f32 %v43_v3, %v44_v5  ;;  %v51_v11 = vrot.slane %v50_v7, 4  ;;  %p124_p5 = scmp.ne.s32.totalorder %s91_s11, %s123_s12  ;;  %p129_p7 = scmp.lt.s32.totalorder %s123_s12, %s123_s12 }
  0x12   :  { %v69_v41 = vsub.s32 %v66_v36, %v68_v37 }
  0x13   :  { %v29_v12 = vrot.slane %v28_v8, 2  ;;  %v35_v13 = vadd.f32 %v34_v9, %v33_v6  ;;  %v46_v14 = vrot.slane %v45_v10, 2  ;;  %v52_v15 = vmax.f32 %v50_v7, %v51_v11  ;;  %p130_p8 = por %p129_p7, %p128_p6 }
  0x15   :  { %v30_v16 = vadd.f32 %v29_v12, %v28_v8  ;;  %v36_v17 = vrot.slane %v35_v13, 2  ;;  %v47_v18 = vmax.f32 %v45_v10, %v46_v14  ;;  %v53_v19 = vrot.slane %v52_v15, 2  ;;  %p131_p9 = pnand %p130_p8, %p124_p5 }
  0x17   :  { %v31_v20 = vrot.slane %v30_v16, 1  ;;  %v37_v21 = vadd.f32 %v36_v17, %v35_v13  ;;  %v48_v22 = vrot.slane %v47_v18, 1  ;;  %v54_v23 = vmax.f32 %v52_v15, %v53_v19 }
  0x19   :  { %v32_v27 = vadd.f32 %v31_v20, %v30_v16  ;;  %v38_v28 = vrot.slane %v37_v21, 1  ;;  %v49_v29 = vmax.f32 %v47_v18, %v48_v22  ;;  %v55_v30 = vrot.slane %v54_v23, 1 }
  0x1b   :  { %v39_v31 = vadd.f32 %v38_v28, %v37_v21  ;;  %v41_v32 = vmul.f32 0.25, %v32_v27  ;;  %v56_v33 = vmax.f32 %v54_v23, %v55_v30 }
  0x1d   :  { %v42_v34 = vmul.f32 0.25, %v39_v31  ;;  %v57_v35 = vadd.f32 %v49_v29, %v41_v32 }
  0x1f   :  { %v58_v38 = vadd.f32 %v56_v33, %v42_v34  ;;  %v59_v39 = vmul.f32 0.5, %v57_v35 }
  0x21   :  { %v60_v40 = vmul.f32 0.5, %v58_v38 }
  0x23   :  { %v63_v42 = vcombine.low %v59_v39, %v60_v40 }
  0x25   :  { %v70_v43 = vrot.slane %v63_v42, %v69_v41 }
  0x27   :  { %v77_v44 = vrot.slane %v70_v43, %v69_v41 }
  0x29   :  { %83 = vst.msk [vmem:[#allocation5] sm:$0x3] %vm81_vm1, %v77_v44 }
  0x2a   :  { %134 = shalt.err (!%p131_p9)
}
  0x2b   :  { %93 = dma.vmem_to_hbm [thread:$0]  %s91_s11, 32, %s167_s1, [#allocation4]  }
  0x2c   :  { %145 = dma.done.wait [#allocation4], 32  }
  0x2d   :  { %146 = vsyncadd [#allocation4], 4294967264 }
  0x2e   :  { %97 = vsyncpa [#allocation3], 1 }
  0x2f   :  { %98 = vsyncpa [#allocation4], 1 }

</bundles_post_ra>
